<compile_context>
chip_gen: v6e
topology: v6e:2x2x1
jax: 0.10.0
libtpu: 0.0.40
codegen_flags: <defaults>
</compile_context>

<pallas_src>
import jax
import jax.numpy as jnp
from jax.experimental import pallas as pl
from jax.experimental.pallas import tpu as pltpu


def attention_block_kernel(x_ref, w_gtp_ref, b_gtp_ref, ww_ref, bw_ref, o_ref):
    """One batch-tile of the AttentionBlock forward pass.

    x_ref    : (TB, C)    input tile
    w_gtp_ref: (C, 3D)    fused [g | theta | phi] projection weights
    b_gtp_ref: (1, 3D)    fused biases
    ww_ref   : (D, C)     output projection weight (pre-transposed)
    bw_ref   : (1, C)     its bias
    o_ref    : (TB, C)    output tile (= W(y) + x)
    """
    D = ww_ref.shape[0]
    x = x_ref[...]                                      # native dtype into MXU

    # Fused C -> 3D projection: one MXU push, f32 accumulate.
    proj = (jnp.dot(x, w_gtp_ref[...], preferred_element_type=jnp.float32)
            + b_gtp_ref[...].astype(jnp.float32))       # (TB, 3D)
    g  = proj[:, 0 * D:1 * D]                           # (TB, D)
    th = proj[:, 1 * D:2 * D]                           # (TB, D)
    ph = proj[:, 2 * D:3 * D]                           # (TB, D)

    # Analytic softmax row-max of f[b,i,j] = ph[b,i] * th[b,j]:
    #   max_j f = ph * max(th)  if ph >= 0  else  ph * min(th)
    th_max = jnp.max(th, axis=-1, keepdims=True)        # (TB, 1)
    th_min = jnp.min(th, axis=-1, keepdims=True)        # (TB, 1)
    m = jnp.where(ph >= 0.0, ph * th_max, ph * th_min)  # (TB, D)

    # One pass over the (TB, D, D) scores; never materialize p = e / sum(e).
    e = jnp.exp(ph[:, :, None] * th[:, None, :] - m[:, :, None])   # (TB, D, D)
    den = jnp.sum(e, axis=-1)                           # (TB, D)
    num = jnp.sum(e * g[:, None, :], axis=-1)           # (TB, D)
    y = num * pl.reciprocal(den, approx=True)           # (TB, D) = softmax(f) @ g

    # Output projection D -> C and residual add in f32.
    wy = (jnp.dot(y.astype(ww_ref.dtype), ww_ref[...],
                  preferred_element_type=jnp.float32)
          + bw_ref[...].astype(jnp.float32))            # (TB, C)
    o_ref[...] = (wy + x.astype(jnp.float32)).astype(o_ref.dtype)


def _pick_tb(B, C):
    """Batch-tile size: VMEM-bounded, sublane-aligned, megacore-friendly."""
    D = max(C // 8, 1)
    if B <= 8:
        return B  # single full tile (block == full array dims)
    # Keep the dominant (tb, D, D) f32 intermediate around <= 4 MiB so the
    # exp / weighted-sum pass stays comfortably inside VMEM on every
    # generation (v7x has only 64 MiB physical), keep tb a multiple of 8 for
    # (8,128) sublane tiling, and leave >= 2 grid steps so the "parallel"
    # batch axis can shard across v7x's two TensorCores.
    cap = (4 * 1024 * 1024) // max(4 * D * D, 4)
    tb = min(B // 2, cap, 1024)
    tb = max(8, (tb // 8) * 8)
    return tb


def _vmem_limit_bytes(C, tb, x_itemsize):
    """Explicit scoped-VMEM request (weights + double-buffered tiles + exp pass)."""
    D = max(C // 8, 1)
    w_bytes = (C * 3 * D + D * C + 3 * D + C) * 4        # weights + biases
    tile_bytes = 2 * 2 * tb * C * x_itemsize             # double-buffered x/out
    inter_bytes = 2 * tb * D * D * 4 + 4 * tb * 3 * D * 4  # e, e*g, proj, misc
    est = w_bytes + tile_bytes + inter_bytes + (1 << 20)
    # At least the 32 MiB scoped default; stay under v7x's 64 MiB physical.
    return int(min(max(2 * est, 32 * 1024 * 1024), 48 * 1024 * 1024))


def attention_block(x, params, *, tb=None):
    """params = (wg, bg, wt, bt, wp, bp, ww, bw) in PyTorch (out, in) layout."""
    B, C = x.shape
    D = C // 8
    wg, bg, wt, bt, wp, bp, ww, bw = params

    if tb is None:
        tb = _pick_tb(B, C)

    # Glue (plain JAX): pre-transpose and fuse the three C->D projections into
    # a single (C, 3D) weight / (1, 3D) bias; pre-transpose the output proj.
    w_gtp = jnp.concatenate([wg.T, wt.T, wp.T], axis=1)          # (C, 3D)
    b_gtp = jnp.concatenate([bg, bt, bp]).reshape(1, 3 * D)      # (1, 3D)
    ww_t = ww.T                                                  # (D, C)
    bw2 = bw.reshape(1, C)                                       # (1, C)

    def invariant(shape):
        # Loop-invariant weight/bias block: same block index every grid step.
        return pl.BlockSpec(shape, lambda i: (0, 0))

    return pl.pallas_call(
        attention_block_kernel,
        out_shape=jax.ShapeDtypeStruct((B, C), x.dtype),
        grid_spec=pltpu.PrefetchScalarGridSpec(
            num_scalar_prefetch=0,
            grid=(pl.cdiv(B, tb),),
            in_specs=[
                pl.BlockSpec((tb, C), lambda i: (i, 0)),          # x tile
                invariant((C, 3 * D)), invariant((1, 3 * D)),     # fused g/theta/phi
                invariant((D, C)), invariant((1, C)),             # W
            ],
            out_specs=pl.BlockSpec((tb, C), lambda i: (i, 0)),
        ),
        compiler_params=pltpu.CompilerParams(
            dimension_semantics=("parallel",),
            vmem_limit_bytes=_vmem_limit_bytes(C, tb, x.dtype.itemsize),
        ),
    )(x, w_gtp, b_gtp, ww_t, bw2)


def attention_block_ref(x, params):
    """Pure-JAX reference mirroring the PyTorch forward exactly."""
    wg, bg, wt, bt, wp, bp, ww, bw = params
    g = x @ wg.T + bg           # (B, D)
    th = x @ wt.T + bt          # (B, D)
    ph = x @ wp.T + bp          # (B, D)
    f = ph[:, :, None] * th[:, None, :]           # phi_x @ theta_x^T  (B, D, D)
    p = jax.nn.softmax(f, axis=-1)
    y = jnp.einsum("bij,bj->bi", p, g)            # (B, D)
    return y @ ww.T + bw + x


if __name__ == "__main__":
    B, C = 8, 32          # in_channels = 32  ->  bottleneck D = 4
    D = C // 8

    key = jax.random.PRNGKey(0)
    ks = jax.random.split(key, 9)

    def lin_init(kw, kb, out_f, in_f):
        # Deterministic PyTorch-like uniform init (bound = 1/sqrt(fan_in))
        bound = 1.0 / jnp.sqrt(jnp.float32(in_f))
        w = jax.random.uniform(kw, (out_f, in_f), jnp.float32, -bound, bound)
        b = jax.random.uniform(kb, (out_f,), jnp.float32, -bound, bound)
        return w, b

    wg, bg = lin_init(ks[0], ks[1], D, C)
    wt, bt = lin_init(ks[2], ks[3], D, C)
    wp, bp = lin_init(ks[4], ks[5], D, C)
    ww, bw = lin_init(ks[6], ks[7], C, D)
    params = (wg, bg, wt, bt, wp, bp, ww, bw)

    x = jax.random.normal(ks[8], (B, C), jnp.float32)

    out = attention_block(x, params)
    out = jax.block_until_ready(out)

    ref = attention_block_ref(x, params)
    assert out.shape == (B, C) and out.dtype == x.dtype
    # Tolerance loosened slightly for pl.reciprocal(approx=True) on the
    # softmax denominator (EUP fast-reciprocal, ~1e-3 relative).
    assert jnp.allclose(out, ref, atol=5e-3, rtol=5e-3), \
        float(jnp.max(jnp.abs(out - ref)))

    print("KERNEL_OK")
</pallas_src>

<mosaic_0001>
module attributes {stable_mosaic.version = 11 : i64} {
  func.func @attention_block_kernel(%arg0: i32, %arg1: memref<8x32xf32, #tpu.memory_space<vmem>>, %arg2: memref<32x12xf32, #tpu.memory_space<vmem>>, %arg3: memref<1x12xf32, #tpu.memory_space<vmem>>, %arg4: memref<4x32xf32, #tpu.memory_space<vmem>>, %arg5: memref<1x32xf32, #tpu.memory_space<vmem>>, %arg6: memref<8x32xf32, #tpu.memory_space<vmem>>) attributes {dimension_semantics = [#tpu.dimension_semantics<parallel>], iteration_bounds = array<i64: 1>, scalar_prefetch = 0 : i64, scratch_operands = 0 : i64, tpu.core_type = #tpu.core_type<tc>, window_params = [{transform_indices = @transform_0, window_bounds = array<i64: 8, 32>}, {pipeline_mode = #tpu.pipeline_mode<synchronous>, transform_indices = @transform_1, window_bounds = array<i64: 32, 12>}, {pipeline_mode = #tpu.pipeline_mode<synchronous>, transform_indices = @transform_2, window_bounds = array<i64: 1, 12>}, {pipeline_mode = #tpu.pipeline_mode<synchronous>, transform_indices = @transform_3, window_bounds = array<i64: 4, 32>}, {pipeline_mode = #tpu.pipeline_mode<synchronous>, transform_indices = @transform_4, window_bounds = array<i64: 1, 32>}, {transform_indices = @transform_5, window_bounds = array<i64: 8, 32>}]} {
    %c0 = arith.constant 0 : index
    %c0_0 = arith.constant 0 : index
    %0 = vector.load %arg1[%c0, %c0_0] : memref<8x32xf32, #tpu.memory_space<vmem>>, vector<8x32xf32>
    %c0_1 = arith.constant 0 : index
    %c0_2 = arith.constant 0 : index
    %1 = vector.load %arg2[%c0_1, %c0_2] : memref<32x12xf32, #tpu.memory_space<vmem>>, vector<32x12xf32>
    %cst = arith.constant dense<0.000000e+00> : vector<8x12xf32>
    %2 = tpu.matmul %0, %1, %cst {dimension_numbers = #tpu.dot_dimension_numbers<[1], [0], [0], [1], [0, 0, 1, 1], [], []>} : vector<8x32xf32>, vector<32x12xf32>, vector<8x12xf32> -> vector<8x12xf32>
    %c0_3 = arith.constant 0 : index
    %c0_4 = arith.constant 0 : index
    %3 = vector.load %arg3[%c0_3, %c0_4] : memref<1x12xf32, #tpu.memory_space<vmem>>, vector<1x12xf32>
    %4 = vector.broadcast %3 : vector<1x12xf32> to vector<8x12xf32>
    %5 = arith.addf %2, %4 : vector<8x12xf32>
    %6 = vector.extract_strided_slice %5 {offsets = [0, 0], sizes = [8, 4], strides = [1, 1]} : vector<8x12xf32> to vector<8x4xf32>
    %7 = vector.extract_strided_slice %5 {offsets = [0, 4], sizes = [8, 4], strides = [1, 1]} : vector<8x12xf32> to vector<8x4xf32>
    %8 = vector.extract_strided_slice %5 {offsets = [0, 8], sizes = [8, 4], strides = [1, 1]} : vector<8x12xf32> to vector<8x4xf32>
    %cst_5 = arith.constant dense<0xFF800000> : vector<8xf32>
    %9 = vector.multi_reduction <maximumf>, %7, %cst_5 [1] : vector<8x4xf32> to vector<8xf32>
    %10 = vector.shape_cast %9 : vector<8xf32> to vector<8x1xf32>
    %cst_6 = arith.constant dense<0x7F800000> : vector<8xf32>
    %11 = vector.multi_reduction <minimumf>, %7, %cst_6 [1] : vector<8x4xf32> to vector<8xf32>
    %12 = vector.shape_cast %11 : vector<8xf32> to vector<8x1xf32>
    %cst_7 = arith.constant 0.000000e+00 : f32
    %13 = vector.broadcast %cst_7 : f32 to vector<8x4xf32>
    %14 = arith.cmpf oge, %8, %13 : vector<8x4xf32>
    %15 = vector.broadcast %10 : vector<8x1xf32> to vector<8x4xf32>
    %16 = arith.mulf %8, %15 : vector<8x4xf32>
    %17 = vector.broadcast %12 : vector<8x1xf32> to vector<8x4xf32>
    %18 = arith.mulf %8, %17 : vector<8x4xf32>
    %19 = arith.select %14, %16, %18 : vector<8x4xi1>, vector<8x4xf32>
    %20 = vector.shape_cast %8 : vector<8x4xf32> to vector<8x4x1xf32>
    %21 = vector.shape_cast %7 : vector<8x4xf32> to vector<8x1x4xf32>
    %22 = vector.broadcast %20 : vector<8x4x1xf32> to vector<8x4x4xf32>
    %23 = vector.broadcast %21 : vector<8x1x4xf32> to vector<8x4x4xf32>
    %24 = arith.mulf %22, %23 : vector<8x4x4xf32>
    %25 = vector.shape_cast %19 : vector<8x4xf32> to vector<8x4x1xf32>
    %26 = vector.broadcast %25 : vector<8x4x1xf32> to vector<8x4x4xf32>
    %27 = arith.subf %24, %26 : vector<8x4x4xf32>
    %28 = math.exp %27 : vector<8x4x4xf32>
    %cst_8 = arith.constant dense<0.000000e+00> : vector<8x4xf32>
    %29 = vector.multi_reduction <add>, %28, %cst_8 [2] : vector<8x4x4xf32> to vector<8x4xf32>
    %30 = vector.shape_cast %6 : vector<8x4xf32> to vector<8x1x4xf32>
    %31 = vector.broadcast %30 : vector<8x1x4xf32> to vector<8x4x4xf32>
    %32 = arith.mulf %28, %31 : vector<8x4x4xf32>
    %cst_9 = arith.constant dense<0.000000e+00> : vector<8x4xf32>
    %33 = vector.multi_reduction <add>, %32, %cst_9 [2] : vector<8x4x4xf32> to vector<8x4xf32>
    %34 = tpu.reciprocal %29 {approx = true} : vector<8x4xf32> -> vector<8x4xf32>
    %35 = arith.mulf %33, %34 : vector<8x4xf32>
    %c0_10 = arith.constant 0 : index
    %c0_11 = arith.constant 0 : index
    %36 = vector.load %arg4[%c0_10, %c0_11] : memref<4x32xf32, #tpu.memory_space<vmem>>, vector<4x32xf32>
    %cst_12 = arith.constant dense<0.000000e+00> : vector<8x32xf32>
    %37 = tpu.matmul %35, %36, %cst_12 {dimension_numbers = #tpu.dot_dimension_numbers<[1], [0], [0], [1], [0, 0, 1, 1], [], []>} : vector<8x4xf32>, vector<4x32xf32>, vector<8x32xf32> -> vector<8x32xf32>
    %c0_13 = arith.constant 0 : index
    %c0_14 = arith.constant 0 : index
    %38 = vector.load %arg5[%c0_13, %c0_14] : memref<1x32xf32, #tpu.memory_space<vmem>>, vector<1x32xf32>
    %39 = vector.broadcast %38 : vector<1x32xf32> to vector<8x32xf32>
    %40 = arith.addf %37, %39 : vector<8x32xf32>
    %41 = arith.addf %40, %0 : vector<8x32xf32>
    %c0_15 = arith.constant 0 : index
    %c0_16 = arith.constant 0 : index
    %42 = vector.load %arg6[%c0_15, %c0_16] : memref<8x32xf32, #tpu.memory_space<vmem>>, vector<8x32xf32>
    tpu.vector_store %arg6[%c0_15, %c0_16], %41 {strides = array<i32>} : memref<8x32xf32, #tpu.memory_space<vmem>>, vector<8x32xf32>,
    return
  }
  func.func @transform_0(%arg0: i32) -> (i32, i32) {
    %c0_i32 = arith.constant 0 : i32
    %c0_i32_0 = arith.constant 0 : i32
    return %arg0, %c0_i32 : i32, i32
  }
  func.func @transform_1(%arg0: i32) -> (i32, i32) {
    %c0_i32 = arith.constant 0 : i32
    %c0_i32_0 = arith.constant 0 : i32
    %c0_i32_1 = arith.constant 0 : i32
    return %c0_i32, %c0_i32_0 : i32, i32
  }
  func.func @transform_2(%arg0: i32) -> (i32, i32) {
    %c0_i32 = arith.constant 0 : i32
    %c0_i32_0 = arith.constant 0 : i32
    %c0_i32_1 = arith.constant 0 : i32
    return %c0_i32, %c0_i32_0 : i32, i32
  }
  func.func @transform_3(%arg0: i32) -> (i32, i32) {
    %c0_i32 = arith.constant 0 : i32
    %c0_i32_0 = arith.constant 0 : i32
    %c0_i32_1 = arith.constant 0 : i32
    return %c0_i32, %c0_i32_0 : i32, i32
  }
  func.func @transform_4(%arg0: i32) -> (i32, i32) {
    %c0_i32 = arith.constant 0 : i32
    %c0_i32_0 = arith.constant 0 : i32
    %c0_i32_1 = arith.constant 0 : i32
    return %c0_i32, %c0_i32_0 : i32, i32
  }
  func.func @transform_5(%arg0: i32) -> (i32, i32) {
    %c0_i32 = arith.constant 0 : i32
    %c0_i32_0 = arith.constant 0 : i32
    return %arg0, %c0_i32 : i32, i32
  }
}

</mosaic_0001>

<bundles_post_ra>
// kernel: tpu_custom_call.1
= control target key start
LH: loop header
LB: loop body
LE: loop exit
PB: predicated region body
PF: predicated region fallthrough
CT: control target
= control target key end

     0   :  { %v774_v1 = vmov 0.0   ;;  %vm775_vm0 = vmmov 0   ;;  %s901_s0 = inlined_call_operand.vmem [shape: f32[8,32], index: 0, kind: input, shape index: {}]   ;;  %s902_s1 = inlined_call_operand.vmem [shape: f32[32,12], index: 1, kind: input, shape index: {}]   ;;  %s903_s2 = inlined_call_operand.vmem [shape: f32[1,12], index: 2, kind: input, shape index: {}]   ;;  %s904_s3 = inlined_call_operand.vmem [shape: f32[4,32], index: 3, kind: input, shape index: {}]   ;;  %s905_s4 = inlined_call_operand.vmem [shape: f32[1,32], index: 4, kind: input, shape index: {}]   ;;  %s906_s5 = inlined_call_operand.hbm [shape: f32[8,32], index: 5, kind: output, shape index: {}]  }
   0x1   :  { %v25_v0 = vld [vmem:[%s902_s1 + $0x18] sm:$0xff]  ;;  %698 = vmatprep.subr.mxu0 %v774_v1  ;;  %v24_v2 = vld [vmem:[%s902_s1 + $0x10] sm:$0xff]  ;;  %706 = vmatprep.mubr.msk.f32.mxu0 %vm775_vm0, %v774_v1 }
   0x2   :  { %699 = vmatpush3.msra.mxu0 %v25_v0  ;;  %709 = vmatprep.subr.mxu1 %v774_v1 }
   0x3   :  { %10 = vsyncpa [#allocation3], 0  ;;  %700 = vmatprep.subr.mxu0 %v774_v1  ;;  %v23_v3 = vld [vmem:[%s902_s1 + $0x8] sm:$0xff]  ;;  %711 = vmatprep.mubr.msk.f32.mxu1 %vm775_vm0, %v774_v1  ;;  %v22_v4 = vld [vmem:[%s902_s1] sm:$0xff]  ;;  %vm33_vm1 = vcmask 261120   ;;  %v118_v6 = vlaneseq  ;;  %vm107_vm2 = vcmask 64544  }
   0x4   :  { %701 = vmatpush3.msra.mxu0 %v24_v2  ;;  %v825_v5 = vld [vmem:[%s901_s0] sm:$0xff]  ;;  %v776_v30 = vmov 1966171168   ;;  %s777_s0 = smov 4   ;;  %s778_s1 = smov 124   ;;  %vm400_vm4 = vcmask 27648  }
   0x5   :  { %702 = vmatprep.subr.mxu0 %v774_v1  ;;  %v830_v7 = vshrl.u32 %v118_v6, 7  ;;  %v686_v8 = vld [vmem:[%s903_s2] ss:$0 sm:$0xff]  ;;  %v185_v31 = vunpack.c.l.s4 %v776_v30  ;;  %vm596_vm5 = vcmask 1043456   ;;  %vm579_vm6 = vcmask 1041409   ;;  %s779_s7 = smov [#allocation2]  }
   0x6   :  { %703 = vmatpush3.msra.mxu0 %v23_v3  ;;  %vm581_vm7 = vcmask 1042434   ;;  %vm583_vm8 = vcmask 1043459   ;;  %vm585_vm9 = vcmask 1044484   ;;  %vm587_vm10 = vcmask 1045509   ;;  %s678_s8 = sshll.u32 %s779_s7, 4  ;;  %s679_s8 = int_to_ptr.vmem [resolvable:$true] %s678_s8 }
   0x7   :  { %704 = vmatprep.subr.mxu0 %v774_v1  ;;  %v836_v9 = vsub.s32 0, %v830_v7  ;;  %v128_v15 = vsub.s32 1, %v830_v7  ;;  %v144_v18 = vsub.s32 3, %v830_v7  ;;  %v152_v20 = vsub.s32 4, %v830_v7  ;;  %s752_s9 = scalar_lea.vmem %s679_s8, 128  ;;  %p757_p1 = scmp.lt.s32.totalorder %s679_s8, %s679_s8 }
   0x8   :  { %705 = vmatpush3.msra.mxu0 %v22_v4  ;;  %v160_v22 = vsub.s32 5, %v830_v7  ;;  %v168_v24 = vsub.s32 6, %v830_v7  ;;  %v176_v26 = vsub.s32 7, %v830_v7  ;;  %v136_v27 = vsub.s32 2, %v830_v7  ;;  %p753_p0 = scmp.ne.s32.totalorder %s679_s8, %s752_s9  ;;  %p758_p2 = scmp.lt.s32.totalorder %s752_s9, %s752_s9 }
   0x9   :  { %707 = vmatmul.mubr.msk.f32.vlgmr.msra.gmra.mxu0 %vm33_vm1, %v825_v5  ;;  %v186_v33 = vunpack.c.0.s8 %v185_v31  ;;  %vm589_vm11 = vcmask 1046534   ;;  %vm591_vm12 = vcmask 1047559   ;;  %vm593_vm13 = vcmask 31744  }
   0xa   :  { %p759_p3 = por %p758_p2, %p757_p1 }
   0xb   :  { %v189_v38 = vsub.s32 %v186_v33, %v830_v7 }
   0xc   :  { %p760_p4 = pnand %p759_p3, %p753_p0 }
  0xc9   :  { %v103_v10 = vpop.f32.mrf.mxu0 }
  0xca   :  { %v104_v11 = vadd.f32 %v686_v8, %v103_v10 }
  0xcb   :  { %v708_v12 = vpop.f32.mrf.mxu0 }
  0xcc   :  { %v108_v13 = vsel %vm107_vm2, %v104_v11, -inf  ;;  %v121_v14 = vrot.slane %v104_v11, %v836_v9  ;;  %v111_v16 = vsel %vm107_vm2, %v104_v11, inf  ;;  %v129_v17 = vrot.slane %v104_v11, %v128_v15 }
  0xcd   :  { %109 = vmax.xlane.f32.xlu0 %v108_v13  ;;  %v145_v19 = vrot.slane %v104_v11, %v144_v18  ;;  %v153_v21 = vrot.slane %v104_v11, %v152_v20  ;;  %v161_v23 = vrot.slane %v104_v11, %v160_v22  ;;  %v169_v25 = vrot.slane %v104_v11, %v168_v24 }
  0xce   :  { %124 = vbcast.lane.b32.xlu1 %v121_v14, 264  ;;  %v177_v28 = vrot.slane %v104_v11, %v176_v26  ;;  %v137_v29 = vrot.slane %v104_v11, %v136_v27  ;;  %vm114_vm3 = vcmp.ge.f32.partialorder %v104_v11, 0.0  ;;  %v190_v41 = vrot.slane %v104_v11, %v189_v38 }
  0xcf   :  { %v183_v45 = vcombine.high %v104_v11, %v104_v11 }
  0xd0   :  { %v198_v44 = vcombine.high %v190_v41, %v190_v41  ;;  %v206_v48 = vrot.slane %v190_v41, %v189_v38 }
  0xd1   :  { %112 = vmin.xlane.f32.xlu0 %v111_v16  ;;  %v197_v50 = vrot.slane %v183_v45, %v189_v38 }
  0xd2   :  { %132 = vbcast.lane.b32.xlu1 %v129_v17, 264  ;;  %v220_v49 = vrot.slane %v198_v44, %v189_v38  ;;  %v235_v53 = vrot.slane %v206_v48, %v836_v9  ;;  %v228_v57 = vcombine.high %v206_v48, %v206_v48 }
  0xd3   :  { %v199_v56 = vcombine.high %v197_v50, %v197_v50  ;;  %v213_v59 = vrot.slane %v197_v50, %v189_v38 }
  0xd4   :  { %v239_v54 = vrot.slane %v220_v49, %v836_v9  ;;  %v230_v55 = vcombine.high %v220_v49, %v220_v49  ;;  %v243_v61 = vrot.slane %v228_v57, %v836_v9 }
  0xd5   :  { %v227_v60 = vrot.slane %v199_v56, %v189_v38  ;;  %v251_v62 = vrot.slane %v213_v59, %v836_v9  ;;  %v229_v0 = vcombine.high %v213_v59, %v213_v59 }
  0xd6   :  { %148 = vbcast.lane.b32.xlu1 %v145_v19, 264  ;;  %v247_v58 = vrot.slane %v230_v55, %v836_v9 }
  0xd7   :  { %v255_v63 = vrot.slane %v227_v60, %v836_v9  ;;  %v231_v1 = vcombine.high %v227_v60, %v227_v60  ;;  %v259_v2 = vrot.slane %v229_v0, %v836_v9 }
  0xd9   :  { %v263_v3 = vrot.slane %v231_v1, %v836_v9 }
  0xda   :  { %156 = vbcast.lane.b32.xlu1 %v153_v21, 264 }
  0xde   :  { %164 = vbcast.lane.b32.xlu1 %v161_v23, 264 }
  0xe2   :  { %172 = vbcast.lane.b32.xlu1 %v169_v25, 264 }
  0xe6   :  { %180 = vbcast.lane.b32.xlu1 %v177_v28, 264 }
  0xe7   :  { %140 = vbcast.lane.b32.xlu0 %v137_v29, 264 }
 0x140   :  { %v125_v4 = vpop.permute.xlu1 %124 }
 0x141   :  { %v272_v16 = vmul.f32 %v235_v53, %v125_v4 }
 0x144   :  { %v133_v8 = vpop.permute.xlu1 %132 }
 0x145   :  { %v273_v21 = vmul.f32 %v239_v54, %v133_v8 }
 0x148   :  { %v149_v10 = vpop.permute.xlu1 %148 }
 0x156   :  { %v110_v32 = vpop.xlane.xlu0 %109 }
 0x157   :  { %v115_v35 = vmul.f32 %v110_v32, %v104_v11 }
 0x15a   :  { %v113_v34 = vpop.xlane.xlu0 %112 }
 0x15b   :  { %v116_v36 = vmul.f32 %v113_v34, %v104_v11  ;;  %v157_v11 = vpop.permute.xlu1 %156 }
 0x15d   :  { %v117_v37 = vsel %vm114_vm3, %v115_v35, %v116_v36 }
 0x15e   :  { %v307_v39 = vrot.slane %v117_v37, %v144_v18  ;;  %v283_v40 = vrot.slane %v117_v37, %v836_v9  ;;  %v315_v42 = vrot.slane %v117_v37, %v152_v20  ;;  %v291_v43 = vrot.slane %v117_v37, %v128_v15  ;;  %v141_v15 = vpop.permute.xlu0 %140 }
 0x15f   :  { %v323_v46 = vrot.slane %v117_v37, %v160_v22  ;;  %v299_v47 = vrot.slane %v117_v37, %v136_v27  ;;  %v339_v51 = vrot.slane %v117_v37, %v176_v26  ;;  %v331_v52 = vrot.slane %v117_v37, %v168_v24  ;;  %v165_v12 = vpop.permute.xlu1 %164 }
 0x160   :  { %310 = vbcast.lane.b32.xlu0 %v307_v39, 264  ;;  %286 = vbcast.lane.b32.xlu1 %v283_v40, 264  ;;  %v275_v20 = vmul.f32 %v247_v58, %v149_v10  ;;  %v276_v26 = vmul.f32 %v251_v62, %v157_v11  ;;  %v277_v27 = vmul.f32 %v255_v63, %v165_v12 }
 0x161   :  { %v274_v28 = vmul.f32 %v243_v61, %v141_v15 }
 0x163   :  { %v173_v13 = vpop.permute.xlu1 %172 }
 0x164   :  { %318 = vbcast.lane.b32.xlu0 %v315_v42, 264  ;;  %294 = vbcast.lane.b32.xlu1 %v291_v43, 264  ;;  %v278_v36 = vmul.f32 %v259_v2, %v173_v13 }
 0x167   :  { %v181_v14 = vpop.permute.xlu1 %180 }
 0x168   :  { %326 = vbcast.lane.b32.xlu0 %v323_v46, 264  ;;  %302 = vbcast.lane.b32.xlu1 %v299_v47, 264  ;;  %v279_v37 = vmul.f32 %v263_v3, %v181_v14 }
 0x16c   :  { %342 = vbcast.lane.b32.xlu0 %v339_v51, 264  ;;  %334 = vbcast.lane.b32.xlu1 %v331_v52, 264 }
 0x170   :  { %427 = vrot.lane.b32.xlu0 %v239_v54, %s777_s0  ;;  %425 = vrot.lane.b32.xlu1 %v235_v53, %s777_s0 }
 0x174   :  { %431 = vrot.lane.b32.xlu0 %v247_v58, %s777_s0  ;;  %429 = vrot.lane.b32.xlu1 %v243_v61, %s777_s0 }
 0x178   :  { %435 = vrot.lane.b32.xlu0 %v255_v63, %s777_s0  ;;  %433 = vrot.lane.b32.xlu1 %v251_v62, %s777_s0 }
 0x17c   :  { %439 = vrot.lane.b32.xlu0 %v263_v3, %s777_s0  ;;  %437 = vrot.lane.b32.xlu1 %v259_v2, %s777_s0 }
 0x1d2   :  { %v287_v17 = vpop.permute.xlu1 %286  ;;  %v311_v18 = vpop.permute.xlu0 %310 }
 0x1d3   :  { %v344_v19 = vsub.f32 %v272_v16, %v287_v17  ;;  %v347_v23 = vsub.f32 %v275_v20, %v311_v18 }
 0x1d5   :  { %v352_v22 = vmul.f32 1.442695, %v344_v19  ;;  %v358_v30 = vmul.f32 1.442695, %v347_v23 }
 0x1d6   :  { %v295_v24 = vpop.permute.xlu1 %294  ;;  %v319_v9 = vpop.permute.xlu0 %318 }
 0x1d7   :  { %720 = vpow2.f32 %v352_v22  ;;  %v345_v25 = vsub.f32 %v273_v21, %v295_v24  ;;  %v348_v31 = vsub.f32 %v276_v26, %v319_v9 }
 0x1d9   :  { %v354_v29 = vmul.f32 1.442695, %v345_v25  ;;  %v360_v39 = vmul.f32 1.442695, %v348_v31 }
 0x1da   :  { %v303_v32 = vpop.permute.xlu1 %302  ;;  %v327_v33 = vpop.permute.xlu0 %326 }
 0x1db   :  { %722 = vpow2.f32 %v354_v29  ;;  %v346_v34 = vsub.f32 %v274_v28, %v303_v32  ;;  %v349_v35 = vsub.f32 %v277_v27, %v327_v33 }
 0x1dc   :  { %724 = vpow2.f32 %v358_v30 }
 0x1dd   :  { %v356_v38 = vmul.f32 1.442695, %v346_v34  ;;  %v362_v42 = vmul.f32 1.442695, %v349_v35 }
 0x1de   :  { %v335_v40 = vpop.permute.xlu1 %334  ;;  %v343_v41 = vpop.permute.xlu0 %342 }
 0x1df   :  { %726 = vpow2.f32 %v356_v38  ;;  %v350_v43 = vsub.f32 %v278_v36, %v335_v40  ;;  %v351_v44 = vsub.f32 %v279_v37, %v343_v41 }
 0x1e0   :  { %728 = vpow2.f32 %v360_v39 }
 0x1e1   :  { %v364_v45 = vmul.f32 1.442695, %v350_v43  ;;  %730 = vpow2.f32 %v362_v42  ;;  %v366_v46 = vmul.f32 1.442695, %v351_v44  ;;  %v529_v42 = vld [vmem:[%s904_s3] sm:$0xf] }
 0x1e2   :  { %v426_v53 = vpop.permute.xlu1 %425  ;;  %v428_v54 = vpop.permute.xlu0 %427  ;;  %710 = vmatpush3.msk.msra.mxu1 %vm596_vm5, %v529_v42 }
 0x1e3   :  { %732 = vpow2.f32 %v364_v45 }
 0x1e4   :  { %v721_v47 = vpop.eup %720  ;;  %734 = vpow2.f32 %v366_v46 }
 0x1e5   :  { %376 = vrot.lane.b32.xlu1 %v721_v47, %s778_s1  ;;  %v449_v59 = vmul.f32 %v721_v47, %v426_v53 }
 0x1e6   :  { %v430_v57 = vpop.permute.xlu1 %429  ;;  %v432_v58 = vpop.permute.xlu0 %431 }
 0x1e8   :  { %v723_v48 = vpop.eup %722 }
 0x1e9   :  { %378 = vrot.lane.b32.xlu0 %v723_v48, %s778_s1  ;;  %v725_v49 = vpop.eup %724  ;;  %v450_v60 = vmul.f32 %v723_v48, %v428_v54 }
 0x1ea   :  { %v452_v62 = vmul.f32 %v725_v49, %v432_v58  ;;  %v434_v63 = vpop.permute.xlu1 %433  ;;  %v436_v0 = vpop.permute.xlu0 %435 }
 0x1ec   :  { %v727_v50 = vpop.eup %726 }
 0x1ed   :  { %380 = vrot.lane.b32.xlu1 %v727_v50, %s778_s1  ;;  %382 = vrot.lane.b32.xlu0 %v725_v49, %s778_s1  ;;  %v729_v51 = vpop.eup %728  ;;  %v451_v61 = vmul.f32 %v727_v50, %v430_v57 }
 0x1ee   :  { %v731_v52 = vpop.eup %730  ;;  %v453_v1 = vmul.f32 %v729_v51, %v434_v63  ;;  %v438_v3 = vpop.permute.xlu1 %437 }
 0x1ef   :  { %v454_v2 = vmul.f32 %v731_v52, %v436_v0  ;;  %v440_v4 = vpop.permute.xlu0 %439 }
 0x1f0   :  { %v733_v55 = vpop.eup %732 }
 0x1f1   :  { %384 = vrot.lane.b32.xlu1 %v729_v51, %s778_s1  ;;  %386 = vrot.lane.b32.xlu0 %v731_v52, %s778_s1  ;;  %v735_v56 = vpop.eup %734  ;;  %v455_v8 = vmul.f32 %v733_v55, %v438_v3  ;;  %v546_v51 = vand.u32 127, %v118_v6 }
 0x1f2   :  { %v456_v10 = vmul.f32 %v735_v56, %v440_v4 }
 0x1f3   :  { %v549_v54 = vsub.s32 %v546_v51, %v830_v7 }
 0x1f5   :  { %388 = vrot.lane.b32.xlu1 %v733_v55, %s778_s1  ;;  %390 = vrot.lane.b32.xlu0 %v735_v56, %s778_s1 }
 0x1f9   :  { %465 = vrot.lane.b32.xlu1 %v449_v59, %s778_s1  ;;  %467 = vrot.lane.b32.xlu0 %v450_v60, %s778_s1 }
 0x1fd   :  { %469 = vrot.lane.b32.xlu1 %v451_v61, %s778_s1  ;;  %471 = vrot.lane.b32.xlu0 %v452_v62, %s778_s1 }
 0x201   :  { %473 = vrot.lane.b32.xlu1 %v453_v1, %s778_s1  ;;  %475 = vrot.lane.b32.xlu0 %v454_v2, %s778_s1 }
 0x205   :  { %477 = vrot.lane.b32.xlu1 %v455_v8, %s778_s1  ;;  %479 = vrot.lane.b32.xlu0 %v456_v10, %s778_s1 }
 0x257   :  { %v377_v11 = vpop.permute.xlu1 %376 }
 0x258   :  { %v401_v12 = vsel %vm400_vm4, %v377_v11, 0.0 }
 0x259   :  { %402 = vadd.xlane.f32.xlu1 %v401_v12 }
 0x25b   :  { %v379_v13 = vpop.permute.xlu0 %378 }
 0x25c   :  { %v404_v14 = vsel %vm400_vm4, %v379_v13, 0.0 }
 0x25d   :  { %405 = vadd.xlane.f32.xlu0 %v404_v14 }
 0x25f   :  { %v381_v15 = vpop.permute.xlu1 %380  ;;  %v383_v16 = vpop.permute.xlu0 %382 }
 0x260   :  { %v407_v17 = vsel %vm400_vm4, %v381_v15, 0.0  ;;  %v410_v18 = vsel %vm400_vm4, %v383_v16, 0.0 }
 0x261   :  { %408 = vadd.xlane.f32.xlu0 %v407_v17  ;;  %411 = vadd.xlane.f32.xlu1 %v410_v18 }
 0x263   :  { %v385_v19 = vpop.permute.xlu1 %384  ;;  %v387_v20 = vpop.permute.xlu0 %386 }
 0x264   :  { %v413_v21 = vsel %vm400_vm4, %v385_v19, 0.0  ;;  %v416_v22 = vsel %vm400_vm4, %v387_v20, 0.0 }
 0x265   :  { %414 = vadd.xlane.f32.xlu0 %v413_v21  ;;  %417 = vadd.xlane.f32.xlu1 %v416_v22 }
 0x267   :  { %v389_v23 = vpop.permute.xlu1 %388  ;;  %v391_v24 = vpop.permute.xlu0 %390 }
 0x268   :  { %v419_v9 = vsel %vm400_vm4, %v389_v23, 0.0  ;;  %v422_v25 = vsel %vm400_vm4, %v391_v24, 0.0 }
 0x269   :  { %420 = vadd.xlane.f32.xlu0 %v419_v9  ;;  %423 = vadd.xlane.f32.xlu1 %v422_v25 }
 0x26b   :  { %v466_v26 = vpop.permute.xlu1 %465  ;;  %v468_v27 = vpop.permute.xlu0 %467 }
 0x26c   :  { %v489_v28 = vsel %vm400_vm4, %v466_v26, 0.0  ;;  %v492_v29 = vsel %vm400_vm4, %v468_v27, 0.0 }
 0x26d   :  { %490 = vadd.xlane.f32.xlu0 %v489_v28  ;;  %493 = vadd.xlane.f32.xlu1 %v492_v29  ;;  %v688_v29 = vld [vmem:[%s905_s4] ss:$0 sm:$0xff] }
 0x26f   :  { %v470_v30 = vpop.permute.xlu1 %469  ;;  %v472_v31 = vpop.permute.xlu0 %471 }
 0x270   :  { %v495_v32 = vsel %vm400_vm4, %v470_v30, 0.0  ;;  %v498_v33 = vsel %vm400_vm4, %v472_v31, 0.0 }
 0x271   :  { %496 = vadd.xlane.f32.xlu0 %v495_v32  ;;  %499 = vadd.xlane.f32.xlu1 %v498_v33 }
 0x273   :  { %v474_v34 = vpop.permute.xlu1 %473  ;;  %v476_v35 = vpop.permute.xlu0 %475 }
 0x274   :  { %v501_v36 = vsel %vm400_vm4, %v474_v34, 0.0  ;;  %v504_v37 = vsel %vm400_vm4, %v476_v35, 0.0 }
 0x275   :  { %502 = vadd.xlane.f32.xlu0 %v501_v36  ;;  %505 = vadd.xlane.f32.xlu1 %v504_v37 }
 0x277   :  { %v478_v38 = vpop.permute.xlu1 %477  ;;  %v480_v39 = vpop.permute.xlu0 %479 }
 0x278   :  { %v507_v40 = vsel %vm400_vm4, %v478_v38, 0.0  ;;  %v510_v41 = vsel %vm400_vm4, %v480_v39, 0.0 }
 0x279   :  { %508 = vadd.xlane.f32.xlu0 %v507_v40  ;;  %511 = vadd.xlane.f32.xlu1 %v510_v41 }
 0x2e2   :  { %v403_v43 = vpop.xlane.xlu1 %402 }
 0x2e3   :  { %736 = vrcp.f32 %v403_v43 }
 0x2e6   :  { %v406_v44 = vpop.xlane.xlu0 %405 }
 0x2e7   :  { %738 = vrcp.f32 %v406_v44 }
 0x2ea   :  { %v412_v45 = vpop.xlane.xlu1 %411  ;;  %v409_v46 = vpop.xlane.xlu0 %408 }
 0x2eb   :  { %740 = vrcp.f32 %v412_v45 }
 0x2ec   :  { %742 = vrcp.f32 %v409_v46 }
 0x2ee   :  { %v418_v47 = vpop.xlane.xlu1 %417  ;;  %v415_v48 = vpop.xlane.xlu0 %414 }
 0x2ef   :  { %744 = vrcp.f32 %v418_v47 }
 0x2f0   :  { %746 = vrcp.f32 %v415_v48  ;;  %v737_v52 = vpop.eup %736 }
 0x2f2   :  { %v424_v49 = vpop.xlane.xlu1 %423  ;;  %v421_v50 = vpop.xlane.xlu0 %420 }
 0x2f3   :  { %748 = vrcp.f32 %v424_v49 }
 0x2f4   :  { %750 = vrcp.f32 %v421_v50  ;;  %v739_v53 = vpop.eup %738 }
 0x2f6   :  { %v494_v55 = vpop.xlane.xlu1 %493  ;;  %v491_v56 = vpop.xlane.xlu0 %490 }
 0x2f7   :  { %v522_v57 = vmul.f32 %v739_v53, %v494_v55  ;;  %v521_v58 = vmul.f32 %v737_v52, %v491_v56 }
 0x2f8   :  { %v741_v59 = vpop.eup %740 }
 0x2f9   :  { %v743_v60 = vpop.eup %742  ;;  %v554_v61 = vrot.slane %v522_v57, %v549_v54  ;;  %v550_v62 = vrot.slane %v521_v58, %v549_v54 }
 0x2fa   :  { %v500_v63 = vpop.xlane.xlu1 %499  ;;  %v497_v0 = vpop.xlane.xlu0 %496 }
 0x2fb   :  { %v524_v1 = vmul.f32 %v741_v59, %v500_v63  ;;  %v523_v2 = vmul.f32 %v743_v60, %v497_v0  ;;  %v580_v8 = vsel %vm579_vm6, %v554_v61, %v550_v62 }
 0x2fc   :  { %v745_v6 = vpop.eup %744 }
 0x2fd   :  { %v558_v3 = vrot.slane %v523_v2, %v549_v54  ;;  %v747_v4 = vpop.eup %746  ;;  %v562_v10 = vrot.slane %v524_v1, %v549_v54 }
 0x2fe   :  { %v506_v7 = vpop.xlane.xlu1 %505  ;;  %v503_v11 = vpop.xlane.xlu0 %502 }
 0x2ff   :  { %v582_v12 = vsel %vm581_vm7, %v558_v3, %v580_v8  ;;  %v526_v13 = vmul.f32 %v745_v6, %v506_v7  ;;  %v525_v14 = vmul.f32 %v747_v4, %v503_v11 }
 0x300   :  { %v749_v15 = vpop.eup %748  ;;  %v584_v19 = vsel %vm583_vm8, %v562_v10, %v582_v12 }
 0x301   :  { %v566_v16 = vrot.slane %v525_v14, %v549_v54  ;;  %v751_v17 = vpop.eup %750  ;;  %v570_v18 = vrot.slane %v526_v13, %v549_v54 }
 0x302   :  { %v512_v20 = vpop.xlane.xlu1 %511  ;;  %v509_v21 = vpop.xlane.xlu0 %508 }
 0x303   :  { %v586_v22 = vsel %vm585_vm9, %v566_v16, %v584_v19  ;;  %v528_v23 = vmul.f32 %v749_v15, %v512_v20  ;;  %v527_v24 = vmul.f32 %v751_v17, %v509_v21 }
 0x304   :  { %v588_v26 = vsel %vm587_vm10, %v570_v18, %v586_v22 }
 0x305   :  { %v578_v9 = vrot.slane %v528_v23, %v549_v54  ;;  %v574_v25 = vrot.slane %v527_v24, %v549_v54 }
 0x307   :  { %v590_v27 = vsel %vm589_vm11, %v574_v25, %v588_v26 }
 0x308   :  { %v592_v28 = vsel %vm591_vm12, %v578_v9, %v590_v27 }
 0x309   :  { %712 = vmatmul.mubr.msk.f32.vlgmr.msra.gmra.mxu1 %vm593_vm13, %v592_v28 }
 0x3c9   :  { %v666_v30 = vpop.f32.mrf.mxu1 }
 0x3ca   :  { %v667_v31 = vadd.f32 %v688_v29, %v666_v30 }
 0x3cb   :  { %v713_v32 = vpop.f32.mrf.mxu1 }
 0x3cc   :  { %v670_v33 = vadd.f32 %v667_v31, %v825_v5 }
 0x3ce   :  { %671 = vst.msk [vmem:[#allocation2] sm:$0xff] %vm33_vm1, %v670_v33 }
 0x3cf   :  { %763 = shalt.err (!%p760_p4)
}
 0x3d0   :  { %681 = dma.vmem_to_hbm [thread:$0]  %s679_s8, 128, %s906_s5, [#allocation3]  }
 0x3d1   :  { %772 = dma.done.wait [#allocation3], 128  }
 0x3d2   :  { %773 = vsyncadd [#allocation3], 4294967168 }
 0x3d3   :  { %685 = vsyncpa [#allocation3], 1 }

</bundles_post_ra>
